<compile_context>
chip_gen: v5e
topology: v5e:2x2
jax: 0.10.0
libtpu: 0.0.40
codegen_flags: <defaults>
</compile_context>

<pallas_src>
import jax
import jax.numpy as jnp
from jax.experimental import pallas as pl
from jax.experimental.pallas import tpu as pltpu

_VMEM = pl.BlockSpec(memory_space=pltpu.MemorySpace.VMEM)
_SMEM = pl.BlockSpec(memory_space=pltpu.MemorySpace.SMEM)


# ------------------------------ fused kernel ------------------------------- #

def _make_decoder_kernel(n_layers: int, embed_dim: int, hidden_dim: int,
                         batch: int, vocab: int):
    H, E, B, V = hidden_dim, embed_dim, batch, vocab

    def kernel(tok_ref,      # SMEM (B,) int32
               emb_ref,      # VMEM (V, E) f32
               state_ref,    # VMEM (B, n_layers*2*H) f32  [h0|c0|h1|c1|...]
               w_x_ref,      # VMEM (n_layers, Dx, 4H) bf16
               w_h_ref,      # VMEM (n_layers, H, 4H)  bf16
               b_ref,        # VMEM (n_layers, 1, 4H)  f32 (b_ih + b_hh)
               w_out_ref,    # VMEM (H, O_pad) bf16
               b_out_ref,    # VMEM (1, O_pad) f32
               pred_ref,     # VMEM (B, O_pad) f32
               hc_ref):      # VMEM (B, n_layers*2*H) f32 (aliased with state)
        # ---- Embedding: exact one-hot matmul (V is tiny; table VMEM-resident).
        col_ids = jax.lax.broadcasted_iota(jnp.int32, (B, V), 1)
        row_ids = jax.lax.broadcasted_iota(jnp.int32, (B, V), 0)
        onehot = jnp.zeros((B, V), jnp.float32)
        for b in range(B):                       # B scalar reads from SMEM
            hit = (row_ids == b) & (col_ids == tok_ref[b])
            onehot = onehot + hit.astype(jnp.float32)
        x = jnp.dot(onehot, emb_ref[...],
                    preferred_element_type=jnp.float32)          # (B, E) f32

        # ---- Single unmasked (8,128) load of the whole state slab.
        state = state_ref[...]

        # ---- n_layers LSTM cells, one time step, fully unrolled.
        for l in range(n_layers):
            din = E if l == 0 else H
            h = state[:, l * 2 * H:l * 2 * H + H]                # (B, H)
            c = state[:, l * 2 * H + H:(l + 1) * 2 * H]          # (B, H)

            w_x = w_x_ref[l][:din, :]                            # (din, 4H) bf16
            w_h = w_h_ref[l]                                     # (H, 4H)  bf16
            gates = (jnp.dot(x.astype(jnp.bfloat16), w_x,
                             preferred_element_type=jnp.float32)
                     + jnp.dot(h.astype(jnp.bfloat16), w_h,
                               preferred_element_type=jnp.float32)
                     + b_ref[l])                                 # (B, 4H) f32

            # One sigmoid + one tanh pass over the full (B, 4H) = (8,128) vreg.
            sig = jax.nn.sigmoid(gates)
            th = jnp.tanh(gates)
            i_g = sig[:, 0 * H:1 * H]
            f_g = sig[:, 1 * H:2 * H]
            g_g = th[:, 2 * H:3 * H]
            o_g = sig[:, 3 * H:4 * H]

            c_new = f_g * c + i_g * g_g
            h_new = o_g * jnp.tanh(c_new)

            # Fixed lane-offset writes into the aliased state slab output.
            hc_ref[:, l * 2 * H:l * 2 * H + H] = h_new
            hc_ref[:, l * 2 * H + H:(l + 1) * 2 * H] = c_new
            x = h_new                                            # feeds next layer

        # ---- Output projection, lane-dense (B, O_pad) unmasked store.
        pred_ref[...] = (jnp.dot(x.astype(jnp.bfloat16), w_out_ref[...],
                                 preferred_element_type=jnp.float32)
                         + b_out_ref[...])

    return kernel


# ------------------------------ thin wrapper ------------------------------- #

@jax.jit
def decoder_forward(tokens, hidden_state, cells, params):
    """tokens: (B,) int; hidden_state, cells: (n_layers, B, H).
    Returns (prediction (B, output_dim), new_hidden, new_cells)."""
    B = tokens.shape[0]
    n_layers, _, H = hidden_state.shape
    V, E = params["emb"].shape
    O = V                                   # Embedding(output_dim) == Linear out
    O_pad = params["w_out_pad"].shape[1]

    # Pack (n_layers, B, H) h/c into the lane-dense (B, n_layers*2*H) slab.
    slab = jnp.transpose(jnp.stack([hidden_state, cells], axis=2),
                         (1, 0, 2, 3)).reshape(B, n_layers * 2 * H)

    pred_pad, new_slab = pl.pallas_call(
        _make_decoder_kernel(n_layers, E, H, B, V),
        out_shape=(jax.ShapeDtypeStruct((B, O_pad), jnp.float32),
                   jax.ShapeDtypeStruct((B, n_layers * 2 * H), jnp.float32)),
        in_specs=[_SMEM] + [_VMEM] * 7,
        out_specs=(_VMEM, _VMEM),
        input_output_aliases={2: 1},        # state slab updated in place
        compiler_params=pltpu.CompilerParams(vmem_limit_bytes=32 * 1024 * 1024),
    )(tokens.astype(jnp.int32), params["emb"], slab,
      params["w_x"], params["w_h"], params["b"],
      params["w_out_pad"], params["b_out_pad"])

    pred = pred_pad[:, :O]
    st = new_slab.reshape(B, n_layers, 2, H)
    new_h = jnp.transpose(st[:, :, 0, :], (1, 0, 2))
    new_c = jnp.transpose(st[:, :, 1, :], (1, 0, 2))
    return pred, new_h, new_c


# ------------------------------ Decoder params ----------------------------- #

def init_decoder_params(key, output_dim, embedding_dim, hidden_dim, n_layers):
    H, E, O = hidden_dim, embedding_dim, output_dim
    Dx = max(E, H)
    O_pad = ((O + 127) // 128) * 128
    keys = jax.random.split(key, 3 + 3 * n_layers)

    emb = 0.1 * jax.random.normal(keys[0], (O, E), jnp.float32)
    w_out = 0.1 * jax.random.normal(keys[1], (H, O), jnp.float32)
    b_out = 0.1 * jax.random.normal(keys[2], (1, O), jnp.float32)
    w_out_pad = (jnp.zeros((H, O_pad), jnp.float32).at[:, :O].set(w_out)
                 .astype(jnp.bfloat16))
    b_out_pad = jnp.zeros((1, O_pad), jnp.float32).at[:, :O].set(b_out)

    w_x_list, w_h_list, b_list = [], [], []
    for l in range(n_layers):
        din = E if l == 0 else H
        kx, kh, kb = keys[3 + 3 * l:6 + 3 * l]
        # Gate columns in PyTorch order [i | f | g | o]; bias = b_ih + b_hh.
        w_x = 0.1 * jax.random.normal(kx, (din, 4 * H), jnp.float32)
        w_h = 0.1 * jax.random.normal(kh, (H, 4 * H), jnp.float32)
        b = 0.1 * jax.random.normal(kb, (1, 4 * H), jnp.float32)
        w_x_list.append(jnp.zeros((Dx, 4 * H), jnp.float32).at[:din].set(w_x))
        w_h_list.append(w_h)
        b_list.append(b)

    return dict(
        emb=emb,
        w_x=jnp.stack(w_x_list).astype(jnp.bfloat16),   # (L, Dx, 4H)
        w_h=jnp.stack(w_h_list).astype(jnp.bfloat16),   # (L, H, 4H)
        b=jnp.stack(b_list),                            # (L, 1, 4H) f32
        w_out_pad=w_out_pad,                            # (H, O_pad) bf16
        b_out_pad=b_out_pad,                            # (1, O_pad) f32
    )


# ------------------------------ pure-JAX reference ------------------------- #

def decoder_reference(tokens, hidden_state, cells, params):
    """Same math (bf16 weights, f32 accumulation) as the kernel."""
    n_layers, _, H = hidden_state.shape
    V, E = params["emb"].shape
    O = V
    x = params["emb"][tokens]                                   # exact gather
    new_h, new_c = [], []
    for l in range(n_layers):
        din = E if l == 0 else H
        h, c = hidden_state[l], cells[l]
        gates = (jnp.dot(x.astype(jnp.bfloat16), params["w_x"][l, :din],
                         preferred_element_type=jnp.float32)
                 + jnp.dot(h.astype(jnp.bfloat16), params["w_h"][l],
                           preferred_element_type=jnp.float32)
                 + params["b"][l])
        i = jax.nn.sigmoid(gates[:, 0 * H:1 * H])
        f = jax.nn.sigmoid(gates[:, 1 * H:2 * H])
        g = jnp.tanh(gates[:, 2 * H:3 * H])
        o = jax.nn.sigmoid(gates[:, 3 * H:4 * H])
        c_new = f * c + i * g
        h_new = o * jnp.tanh(c_new)
        new_h.append(h_new)
        new_c.append(c_new)
        x = h_new
    pred = (jnp.dot(x.astype(jnp.bfloat16), params["w_out_pad"],
                    preferred_element_type=jnp.float32)
            + params["b_out_pad"])[:, :O]
    return pred, jnp.stack(new_h), jnp.stack(new_c)


# ----------------------------------- main ----------------------------------- #

if __name__ == "__main__":
    OUTPUT_DIM = 16      # vocab size
    EMBED_DIM = 32
    HIDDEN_DIM = 32
    N_LAYERS = 2
    BATCH = 8

    key = jax.random.PRNGKey(0)
    k_par, k_tok, k_h, k_c = jax.random.split(key, 4)

    params = init_decoder_params(k_par, OUTPUT_DIM, EMBED_DIM, HIDDEN_DIM, N_LAYERS)
    tokens = jax.random.randint(k_tok, (BATCH,), 0, OUTPUT_DIM, dtype=jnp.int32)
    hidden_state = jax.random.normal(k_h, (N_LAYERS, BATCH, HIDDEN_DIM), jnp.float32)
    cells = jax.random.normal(k_c, (N_LAYERS, BATCH, HIDDEN_DIM), jnp.float32)

    pred, new_h, new_c = decoder_forward(tokens, hidden_state, cells, params)
    jax.block_until_ready((pred, new_h, new_c))

    ref_pred, ref_h, ref_c = decoder_reference(tokens, hidden_state, cells, params)
    ok = (jnp.allclose(pred, ref_pred, rtol=1e-4, atol=1e-4)
          and jnp.allclose(new_h, ref_h, rtol=1e-4, atol=1e-4)
          and jnp.allclose(new_c, ref_c, rtol=1e-4, atol=1e-4))
    if not bool(ok):
        raise AssertionError("Pallas decoder output mismatch vs JAX reference")

    print("KERNEL_OK")
</pallas_src>

<mosaic_0001>
module attributes {stable_mosaic.version = 11 : i64} {
  func.func @kernel(%arg0: memref<8xi32, #tpu.memory_space<smem>>, %arg1: memref<16x32xf32, #tpu.memory_space<vmem>>, %arg2: memref<8x128xf32, #tpu.memory_space<vmem>>, %arg3: memref<2x32x128xbf16, #tpu.memory_space<vmem>>, %arg4: memref<2x32x128xbf16, #tpu.memory_space<vmem>>, %arg5: memref<2x1x128xf32, #tpu.memory_space<vmem>>, %arg6: memref<32x128xbf16, #tpu.memory_space<vmem>>, %arg7: memref<1x128xf32, #tpu.memory_space<vmem>>, %arg8: memref<8x128xf32, #tpu.memory_space<vmem>>, %arg9: memref<8x128xf32, #tpu.memory_space<vmem>>) attributes {dimension_semantics = [], scalar_prefetch = 0 : i64, scratch_operands = 0 : i64, tpu.core_type = #tpu.core_type<tc>} {
    %0 = tpu.iota {dimensions = array<i32: 1>} : vector<8x16xi32>
    %1 = tpu.iota {dimensions = array<i32: 0>} : vector<8x16xi32>
    %cst = arith.constant 0.000000e+00 : f32
    %2 = vector.broadcast %cst : f32 to vector<8x16xf32>
    %c0_i32 = arith.constant 0 : i32
    %3 = vector.broadcast %c0_i32 : i32 to vector<8x16xi32>
    %4 = arith.cmpi eq, %1, %3 : vector<8x16xi32>
    %c0 = arith.constant 0 : index
    %5 = memref.load %arg0[%c0] : memref<8xi32, #tpu.memory_space<smem>>
    %6 = vector.broadcast %5 : i32 to vector<8x16xi32>
    %7 = arith.cmpi eq, %0, %6 : vector<8x16xi32>
    %8 = arith.andi %4, %7 : vector<8x16xi1>
    %9 = arith.extui %8 : vector<8x16xi1> to vector<8x16xi32>
    %10 = arith.sitofp %9 : vector<8x16xi32> to vector<8x16xf32>
    %11 = arith.addf %2, %10 : vector<8x16xf32>
    %c1_i32 = arith.constant 1 : i32
    %12 = vector.broadcast %c1_i32 : i32 to vector<8x16xi32>
    %13 = arith.cmpi eq, %1, %12 : vector<8x16xi32>
    %c1 = arith.constant 1 : index
    %14 = memref.load %arg0[%c1] : memref<8xi32, #tpu.memory_space<smem>>
    %15 = vector.broadcast %14 : i32 to vector<8x16xi32>
    %16 = arith.cmpi eq, %0, %15 : vector<8x16xi32>
    %17 = arith.andi %13, %16 : vector<8x16xi1>
    %18 = arith.extui %17 : vector<8x16xi1> to vector<8x16xi32>
    %19 = arith.sitofp %18 : vector<8x16xi32> to vector<8x16xf32>
    %20 = arith.addf %11, %19 : vector<8x16xf32>
    %c2_i32 = arith.constant 2 : i32
    %21 = vector.broadcast %c2_i32 : i32 to vector<8x16xi32>
    %22 = arith.cmpi eq, %1, %21 : vector<8x16xi32>
    %c2 = arith.constant 2 : index
    %23 = memref.load %arg0[%c2] : memref<8xi32, #tpu.memory_space<smem>>
    %24 = vector.broadcast %23 : i32 to vector<8x16xi32>
    %25 = arith.cmpi eq, %0, %24 : vector<8x16xi32>
    %26 = arith.andi %22, %25 : vector<8x16xi1>
    %27 = arith.extui %26 : vector<8x16xi1> to vector<8x16xi32>
    %28 = arith.sitofp %27 : vector<8x16xi32> to vector<8x16xf32>
    %29 = arith.addf %20, %28 : vector<8x16xf32>
    %c3_i32 = arith.constant 3 : i32
    %30 = vector.broadcast %c3_i32 : i32 to vector<8x16xi32>
    %31 = arith.cmpi eq, %1, %30 : vector<8x16xi32>
    %c3 = arith.constant 3 : index
    %32 = memref.load %arg0[%c3] : memref<8xi32, #tpu.memory_space<smem>>
    %33 = vector.broadcast %32 : i32 to vector<8x16xi32>
    %34 = arith.cmpi eq, %0, %33 : vector<8x16xi32>
    %35 = arith.andi %31, %34 : vector<8x16xi1>
    %36 = arith.extui %35 : vector<8x16xi1> to vector<8x16xi32>
    %37 = arith.sitofp %36 : vector<8x16xi32> to vector<8x16xf32>
    %38 = arith.addf %29, %37 : vector<8x16xf32>
    %c4_i32 = arith.constant 4 : i32
    %39 = vector.broadcast %c4_i32 : i32 to vector<8x16xi32>
    %40 = arith.cmpi eq, %1, %39 : vector<8x16xi32>
    %c4 = arith.constant 4 : index
    %41 = memref.load %arg0[%c4] : memref<8xi32, #tpu.memory_space<smem>>
    %42 = vector.broadcast %41 : i32 to vector<8x16xi32>
    %43 = arith.cmpi eq, %0, %42 : vector<8x16xi32>
    %44 = arith.andi %40, %43 : vector<8x16xi1>
    %45 = arith.extui %44 : vector<8x16xi1> to vector<8x16xi32>
    %46 = arith.sitofp %45 : vector<8x16xi32> to vector<8x16xf32>
    %47 = arith.addf %38, %46 : vector<8x16xf32>
    %c5_i32 = arith.constant 5 : i32
    %48 = vector.broadcast %c5_i32 : i32 to vector<8x16xi32>
    %49 = arith.cmpi eq, %1, %48 : vector<8x16xi32>
    %c5 = arith.constant 5 : index
    %50 = memref.load %arg0[%c5] : memref<8xi32, #tpu.memory_space<smem>>
    %51 = vector.broadcast %50 : i32 to vector<8x16xi32>
    %52 = arith.cmpi eq, %0, %51 : vector<8x16xi32>
    %53 = arith.andi %49, %52 : vector<8x16xi1>
    %54 = arith.extui %53 : vector<8x16xi1> to vector<8x16xi32>
    %55 = arith.sitofp %54 : vector<8x16xi32> to vector<8x16xf32>
    %56 = arith.addf %47, %55 : vector<8x16xf32>
    %c6_i32 = arith.constant 6 : i32
    %57 = vector.broadcast %c6_i32 : i32 to vector<8x16xi32>
    %58 = arith.cmpi eq, %1, %57 : vector<8x16xi32>
    %c6 = arith.constant 6 : index
    %59 = memref.load %arg0[%c6] : memref<8xi32, #tpu.memory_space<smem>>
    %60 = vector.broadcast %59 : i32 to vector<8x16xi32>
    %61 = arith.cmpi eq, %0, %60 : vector<8x16xi32>
    %62 = arith.andi %58, %61 : vector<8x16xi1>
    %63 = arith.extui %62 : vector<8x16xi1> to vector<8x16xi32>
    %64 = arith.sitofp %63 : vector<8x16xi32> to vector<8x16xf32>
    %65 = arith.addf %56, %64 : vector<8x16xf32>
    %c7_i32 = arith.constant 7 : i32
    %66 = vector.broadcast %c7_i32 : i32 to vector<8x16xi32>
    %67 = arith.cmpi eq, %1, %66 : vector<8x16xi32>
    %c7 = arith.constant 7 : index
    %68 = memref.load %arg0[%c7] : memref<8xi32, #tpu.memory_space<smem>>
    %69 = vector.broadcast %68 : i32 to vector<8x16xi32>
    %70 = arith.cmpi eq, %0, %69 : vector<8x16xi32>
    %71 = arith.andi %67, %70 : vector<8x16xi1>
    %72 = arith.extui %71 : vector<8x16xi1> to vector<8x16xi32>
    %73 = arith.sitofp %72 : vector<8x16xi32> to vector<8x16xf32>
    %74 = arith.addf %65, %73 : vector<8x16xf32>
    %c0_0 = arith.constant 0 : index
    %c0_1 = arith.constant 0 : index
    %75 = vector.load %arg1[%c0_0, %c0_1] : memref<16x32xf32, #tpu.memory_space<vmem>>, vector<16x32xf32>
    %cst_2 = arith.constant dense<0.000000e+00> : vector<8x32xf32>
    %76 = tpu.matmul %74, %75, %cst_2 {dimension_numbers = #tpu.dot_dimension_numbers<[1], [0], [0], [1], [0, 0, 1, 1], [], []>} : vector<8x16xf32>, vector<16x32xf32>, vector<8x32xf32> -> vector<8x32xf32>
    %c0_3 = arith.constant 0 : index
    %c0_4 = arith.constant 0 : index
    %77 = vector.load %arg2[%c0_3, %c0_4] : memref<8x128xf32, #tpu.memory_space<vmem>>, vector<8x128xf32>
    %78 = vector.extract_strided_slice %77 {offsets = [0, 0], sizes = [8, 32], strides = [1, 1]} : vector<8x128xf32> to vector<8x32xf32>
    %79 = vector.extract_strided_slice %77 {offsets = [0, 32], sizes = [8, 32], strides = [1, 1]} : vector<8x128xf32> to vector<8x32xf32>
    %c0_5 = arith.constant 0 : index
    %c0_6 = arith.constant 0 : index
    %c0_7 = arith.constant 0 : index
    %80 = vector.load %arg3[%c0_5, %c0_6, %c0_7] : memref<2x32x128xbf16, #tpu.memory_space<vmem>>, vector<1x32x128xbf16>
    %81 = vector.shape_cast %80 : vector<1x32x128xbf16> to vector<32x128xbf16>
    %c0_8 = arith.constant 0 : index
    %c0_9 = arith.constant 0 : index
    %c0_10 = arith.constant 0 : index
    %82 = vector.load %arg4[%c0_8, %c0_9, %c0_10] : memref<2x32x128xbf16, #tpu.memory_space<vmem>>, vector<1x32x128xbf16>
    %83 = vector.shape_cast %82 : vector<1x32x128xbf16> to vector<32x128xbf16>
    %84 = arith.truncf %76 : vector<8x32xf32> to vector<8x32xbf16>
    %cst_11 = arith.constant dense<0.000000e+00> : vector<8x128xf32>
    %85 = tpu.matmul %84, %81, %cst_11 {dimension_numbers = #tpu.dot_dimension_numbers<[1], [0], [0], [1], [0, 0, 1, 1], [], []>} : vector<8x32xbf16>, vector<32x128xbf16>, vector<8x128xf32> -> vector<8x128xf32>
    %86 = arith.truncf %78 : vector<8x32xf32> to vector<8x32xbf16>
    %cst_12 = arith.constant dense<0.000000e+00> : vector<8x128xf32>
    %87 = tpu.matmul %86, %83, %cst_12 {dimension_numbers = #tpu.dot_dimension_numbers<[1], [0], [0], [1], [0, 0, 1, 1], [], []>} : vector<8x32xbf16>, vector<32x128xbf16>, vector<8x128xf32> -> vector<8x128xf32>
    %88 = arith.addf %85, %87 : vector<8x128xf32>
    %c0_13 = arith.constant 0 : index
    %c0_14 = arith.constant 0 : index
    %c0_15 = arith.constant 0 : index
    %89 = vector.load %arg5[%c0_13, %c0_14, %c0_15] : memref<2x1x128xf32, #tpu.memory_space<vmem>>, vector<1x1x128xf32>
    %90 = vector.shape_cast %89 : vector<1x1x128xf32> to vector<1x128xf32>
    %91 = vector.broadcast %90 : vector<1x128xf32> to vector<8x128xf32>
    %92 = arith.addf %88, %91 : vector<8x128xf32>
    %93 = arith.negf %92 : vector<8x128xf32>
    %94 = math.exp %93 : vector<8x128xf32>
    %cst_16 = arith.constant 1.000000e+00 : f32
    %95 = vector.broadcast %cst_16 : f32 to vector<8x128xf32>
    %96 = arith.addf %95, %94 : vector<8x128xf32>
    %97 = arith.divf %95, %96 : vector<8x128xf32>
    %98 = math.tanh %92 : vector<8x128xf32>
    %99 = vector.extract_strided_slice %97 {offsets = [0, 0], sizes = [8, 32], strides = [1, 1]} : vector<8x128xf32> to vector<8x32xf32>
    %100 = vector.extract_strided_slice %97 {offsets = [0, 32], sizes = [8, 32], strides = [1, 1]} : vector<8x128xf32> to vector<8x32xf32>
    %101 = vector.extract_strided_slice %98 {offsets = [0, 64], sizes = [8, 32], strides = [1, 1]} : vector<8x128xf32> to vector<8x32xf32>
    %102 = vector.extract_strided_slice %97 {offsets = [0, 96], sizes = [8, 32], strides = [1, 1]} : vector<8x128xf32> to vector<8x32xf32>
    %103 = arith.mulf %100, %79 : vector<8x32xf32>
    %104 = arith.mulf %99, %101 : vector<8x32xf32>
    %105 = arith.addf %103, %104 : vector<8x32xf32>
    %106 = math.tanh %105 : vector<8x32xf32>
    %107 = arith.mulf %102, %106 : vector<8x32xf32>
    %c0_17 = arith.constant 0 : index
    %c0_18 = arith.constant 0 : index
    %108 = vector.load %arg9[%c0_17, %c0_18] : memref<8x128xf32, #tpu.memory_space<vmem>>, vector<8x32xf32>
    tpu.vector_store %arg9[%c0_17, %c0_18], %107 {strides = array<i32>} : memref<8x128xf32, #tpu.memory_space<vmem>>, vector<8x32xf32>,
    %c0_19 = arith.constant 0 : index
    %c32 = arith.constant 32 : index
    %109 = vector.load %arg9[%c0_19, %c32] : memref<8x128xf32, #tpu.memory_space<vmem>>, vector<8x32xf32>
    tpu.vector_store %arg9[%c0_19, %c32], %105 {strides = array<i32>} : memref<8x128xf32, #tpu.memory_space<vmem>>, vector<8x32xf32>,
    %110 = vector.extract_strided_slice %77 {offsets = [0, 64], sizes = [8, 32], strides = [1, 1]} : vector<8x128xf32> to vector<8x32xf32>
    %111 = vector.extract_strided_slice %77 {offsets = [0, 96], sizes = [8, 32], strides = [1, 1]} : vector<8x128xf32> to vector<8x32xf32>
    %c1_20 = arith.constant 1 : index
    %c0_21 = arith.constant 0 : index
    %c0_22 = arith.constant 0 : index
    %112 = vector.load %arg3[%c1_20, %c0_21, %c0_22] : memref<2x32x128xbf16, #tpu.memory_space<vmem>>, vector<1x32x128xbf16>
    %113 = vector.shape_cast %112 : vector<1x32x128xbf16> to vector<32x128xbf16>
    %c1_23 = arith.constant 1 : index
    %c0_24 = arith.constant 0 : index
    %c0_25 = arith.constant 0 : index
    %114 = vector.load %arg4[%c1_23, %c0_24, %c0_25] : memref<2x32x128xbf16, #tpu.memory_space<vmem>>, vector<1x32x128xbf16>
    %115 = vector.shape_cast %114 : vector<1x32x128xbf16> to vector<32x128xbf16>
    %116 = arith.truncf %107 : vector<8x32xf32> to vector<8x32xbf16>
    %cst_26 = arith.constant dense<0.000000e+00> : vector<8x128xf32>
    %117 = tpu.matmul %116, %113, %cst_26 {dimension_numbers = #tpu.dot_dimension_numbers<[1], [0], [0], [1], [0, 0, 1, 1], [], []>} : vector<8x32xbf16>, vector<32x128xbf16>, vector<8x128xf32> -> vector<8x128xf32>
    %118 = arith.truncf %110 : vector<8x32xf32> to vector<8x32xbf16>
    %cst_27 = arith.constant dense<0.000000e+00> : vector<8x128xf32>
    %119 = tpu.matmul %118, %115, %cst_27 {dimension_numbers = #tpu.dot_dimension_numbers<[1], [0], [0], [1], [0, 0, 1, 1], [], []>} : vector<8x32xbf16>, vector<32x128xbf16>, vector<8x128xf32> -> vector<8x128xf32>
    %120 = arith.addf %117, %119 : vector<8x128xf32>
    %c1_28 = arith.constant 1 : index
    %c0_29 = arith.constant 0 : index
    %c0_30 = arith.constant 0 : index
    %121 = vector.load %arg5[%c1_28, %c0_29, %c0_30] : memref<2x1x128xf32, #tpu.memory_space<vmem>>, vector<1x1x128xf32>
    %122 = vector.shape_cast %121 : vector<1x1x128xf32> to vector<1x128xf32>
    %123 = vector.broadcast %122 : vector<1x128xf32> to vector<8x128xf32>
    %124 = arith.addf %120, %123 : vector<8x128xf32>
    %125 = arith.negf %124 : vector<8x128xf32>
    %126 = math.exp %125 : vector<8x128xf32>
    %cst_31 = arith.constant 1.000000e+00 : f32
    %127 = vector.broadcast %cst_31 : f32 to vector<8x128xf32>
    %128 = arith.addf %127, %126 : vector<8x128xf32>
    %129 = arith.divf %127, %128 : vector<8x128xf32>
    %130 = math.tanh %124 : vector<8x128xf32>
    %131 = vector.extract_strided_slice %129 {offsets = [0, 0], sizes = [8, 32], strides = [1, 1]} : vector<8x128xf32> to vector<8x32xf32>
    %132 = vector.extract_strided_slice %129 {offsets = [0, 32], sizes = [8, 32], strides = [1, 1]} : vector<8x128xf32> to vector<8x32xf32>
    %133 = vector.extract_strided_slice %130 {offsets = [0, 64], sizes = [8, 32], strides = [1, 1]} : vector<8x128xf32> to vector<8x32xf32>
    %134 = vector.extract_strided_slice %129 {offsets = [0, 96], sizes = [8, 32], strides = [1, 1]} : vector<8x128xf32> to vector<8x32xf32>
    %135 = arith.mulf %132, %111 : vector<8x32xf32>
    %136 = arith.mulf %131, %133 : vector<8x32xf32>
    %137 = arith.addf %135, %136 : vector<8x32xf32>
    %138 = math.tanh %137 : vector<8x32xf32>
    %139 = arith.mulf %134, %138 : vector<8x32xf32>
    %c0_32 = arith.constant 0 : index
    %c64 = arith.constant 64 : index
    %140 = vector.load %arg9[%c0_32, %c64] : memref<8x128xf32, #tpu.memory_space<vmem>>, vector<8x32xf32>
    tpu.vector_store %arg9[%c0_32, %c64], %139 {strides = array<i32>} : memref<8x128xf32, #tpu.memory_space<vmem>>, vector<8x32xf32>,
    %c0_33 = arith.constant 0 : index
    %c96 = arith.constant 96 : index
    %141 = vector.load %arg9[%c0_33, %c96] : memref<8x128xf32, #tpu.memory_space<vmem>>, vector<8x32xf32>
    tpu.vector_store %arg9[%c0_33, %c96], %137 {strides = array<i32>} : memref<8x128xf32, #tpu.memory_space<vmem>>, vector<8x32xf32>,
    %142 = arith.truncf %139 : vector<8x32xf32> to vector<8x32xbf16>
    %c0_34 = arith.constant 0 : index
    %c0_35 = arith.constant 0 : index
    %143 = vector.load %arg6[%c0_34, %c0_35] : memref<32x128xbf16, #tpu.memory_space<vmem>>, vector<32x128xbf16>
    %cst_36 = arith.constant dense<0.000000e+00> : vector<8x128xf32>
    %144 = tpu.matmul %142, %143, %cst_36 {dimension_numbers = #tpu.dot_dimension_numbers<[1], [0], [0], [1], [0, 0, 1, 1], [], []>} : vector<8x32xbf16>, vector<32x128xbf16>, vector<8x128xf32> -> vector<8x128xf32>
    %c0_37 = arith.constant 0 : index
    %c0_38 = arith.constant 0 : index
    %145 = vector.load %arg7[%c0_37, %c0_38] : memref<1x128xf32, #tpu.memory_space<vmem>>, vector<1x128xf32>
    %146 = vector.broadcast %145 : vector<1x128xf32> to vector<8x128xf32>
    %147 = arith.addf %144, %146 : vector<8x128xf32>
    %c0_39 = arith.constant 0 : index
    %c0_40 = arith.constant 0 : index
    %148 = vector.load %arg8[%c0_39, %c0_40] : memref<8x128xf32, #tpu.memory_space<vmem>>, vector<8x128xf32>
    tpu.vector_store %arg8[%c0_39, %c0_40], %147 {strides = array<i32>} : memref<8x128xf32, #tpu.memory_space<vmem>>, vector<8x128xf32>,
    return
  }
}

</mosaic_0001>

<bundles_post_ra>
// kernel: decoder_forward.1
= control target key start
LH: loop header
LB: loop body
LE: loop exit
PB: predicated region body
PF: predicated region fallthrough
CT: control target
= control target key end

     0   :  { %15 = vsyncpa [#allocation4], 0  ;;  %s751_s0 = inlined_call_operand.vmem [shape: s32[8], index: 0, kind: input, shape index: {}]   ;;  %s752_s1 = inlined_call_operand.vmem [shape: f32[16,32], index: 1, kind: input, shape index: {}]   ;;  %s753_s2 = inlined_call_operand.vmem [shape: f32[8,128], index: 2, kind: input, shape index: {}, may-alias: {2,9}]   ;;  %s754_s3 = inlined_call_operand.vmem [shape: bf16[2,32,128], index: 3, kind: input, shape index: {}]   ;;  %s755_s4 = inlined_call_operand.vmem [shape: bf16[2,32,128], index: 4, kind: input, shape index: {}]   ;;  %s756_s5 = inlined_call_operand.vmem [shape: f32[2,1,128], index: 5, kind: input, shape index: {}]   ;;  %s757_s6 = inlined_call_operand.vmem [shape: bf16[32,128], index: 6, kind: input, shape index: {}]   ;;  %s758_s7 = inlined_call_operand.vmem [shape: f32[1,128], index: 7, kind: input, shape index: {}]   ;;  %s759_s8 = inlined_call_operand.hbm [shape: f32[8,128], index: 8, kind: output, shape index: {0}]   ;;  %s760_s9 = inlined_call_operand.vmem [shape: f32[8,128], index: 9, kind: output, shape index: {1}, may-alias: {2,9}]  }
   0x1   :  { %16 = vsyncpa [#allocation3], 0  ;;  %s22_s11 = sshll.u32 %s751_s0, 4  ;;  %s598_s12 = smov [#allocation2]   ;;  %s23_s11 = int_to_ptr.vmem [resolvable:$true] %s22_s11 }
   0x2   :  { %25 = dma.vmem_to_smem %s23_s11, 16, %s598_s12, [#allocation4]  }
   0x3   :  { %594 = dma.done.wait [#allocation4], 16  }
   0x4   :  { %595 = vsyncadd [#allocation4], 4294967280 }
   0x5   :  { %44 = sfence }
   0x6   :  { %v115_v0 = vld [vmem:[%s752_s1 + $0x8] sm:$0xff]  ;;  %v114_v1 = vld [vmem:[%s752_s1] sm:$0xff]  ;;  %v46_v2 = vlaneseq  ;;  %s51_s17 = sld [smem:[#allocation2]]  ;;  %v599_v11 = vmov 0.0   ;;  %s601_s14 = smov 32  }
   0x7   :  { %134 = vmatpush.msra.mxu0 %v115_v0  ;;  %s452_s18 = sld [smem:[#allocation2 + $0x1]]  ;;  %v526_v3 = vld [vmem:[%s755_s4 + $0x8] sm:$0xff]  ;;  %v525_v5 = vld [vmem:[%s755_s4] sm:$0xff]  ;;  %v530_v0 = vld [vmem:[%s755_s4 + $0x18] sm:$0xff]  ;;  %s437_s16 = sshll.u32 %s759_s8, 4  ;;  %s438_s16 = int_to_ptr.hbm [resolvable:$true] %s437_s16 }
   0x8   :  { %v524_v4 = vld [vmem:[%s754_s3 + $0x8] sm:$0xff]  ;;  %v47_v6 = vand.u32 127, %v46_v2  ;;  %v49_v7 = vshrl.u32 %v46_v2, 7  ;;  %s454_s24 = sld [smem:[#allocation2 + $0x2]]  ;;  %173 = vmatpush.bf16.msra.mxu1 %v526_v3  ;;  %v523_v32 = vld [vmem:[%s754_s3] sm:$0xff]  ;;  %292 = vmatpush.bf16.msra.mxu3 %v530_v0  ;;  %v528_v2 = vld [vmem:[%s754_s3 + $0x18] sm:$0xff] }
   0x9   :  { %135 = vmatpush.msra.mxu0 %v114_v1  ;;  %s456_s1 = sld [smem:[#allocation2 + $0x3]]  ;;  %201 = vmatpush.bf16.msra.mxu2 %v524_v4  ;;  %v140_v33 = vld [vmem:[%s753_s2] sm:$0xff]  ;;  %s600_s2 = smov 64   ;;  %v529_v1 = vld [vmem:[%s755_s4 + $0x10] sm:$0xff] }
   0xa   :  { %s458_s25 = sld [smem:[#allocation2 + $0x4]]  ;;  %vm50_vm0 = vcmp.eq.s32.totalorder %v49_v7, 0  ;;  %vm58_vm1 = vcmp.eq.s32.totalorder %v49_v7, 1  ;;  %vm66_vm3 = vcmp.eq.s32.totalorder %v49_v7, 2  ;;  %vm74_vm6 = vcmp.eq.s32.totalorder %v49_v7, 3  ;;  %v527_v3 = vld [vmem:[%s754_s3 + $0x10] sm:$0xff] }
   0xb   :  { %s672_s26 = sld [smem:[#allocation2 + $0x5]]  ;;  %vm82_vm9 = vcmp.eq.s32.totalorder %v49_v7, 4  ;;  %vm90_vm12 = vcmp.eq.s32.totalorder %v49_v7, 5  ;;  %v150_v34 = vpack.c.bf16 %v140_v33, %v140_v33  ;;  %v539_v39 = vld [vmem:[%s756_s5] ss:$0 sm:$0xff]  ;;  %323 = vmatpush.bf16.msrb.mxu0 %v528_v2 }
   0xc   :  { %v52_v8 = vstv %s51_s17  ;;  %s674_s27 = sld [smem:[#allocation2 + $0x6]]  ;;  %174 = vmatpush.bf16.msra.mxu1 %v525_v5  ;;  %293 = vmatpush.bf16.msra.mxu3 %v529_v1 }
   0xd   :  { %vm53_vm2 = vcmp.eq.s32.totalorder %v47_v6, %v52_v8  ;;  %v60_v9 = vstv %s452_s18  ;;  %s676_s28 = sld [smem:[#allocation2 + $0x7]]  ;;  %202 = vmatpush.bf16.msra.mxu2 %v523_v32 }
   0xe   :  { %vm54_vm4 = vmand %vm50_vm0, %vm53_vm2  ;;  %vm61_vm5 = vcmp.eq.s32.totalorder %v47_v6, %v60_v9  ;;  %v68_v10 = vstv %s454_s24  ;;  %vm98_vm2 = vcmp.eq.s32.totalorder %v49_v7, 6 }
   0xf   :  { %v451_v12 = vsel %vm54_vm4, 1.0, %v599_v11  ;;  %vm62_vm7 = vmand %vm58_vm1, %vm61_vm5  ;;  %vm69_vm8 = vcmp.eq.s32.totalorder %v47_v6, %v68_v10  ;;  %v76_v13 = vstv %s456_s1  ;;  %324 = vmatpush.bf16.msrb.mxu0 %v527_v3  ;;  %s602_s1 = smov 96  }
  0x10   :  { %v453_v14 = vsel %vm62_vm7, 1.0, %v599_v11  ;;  %vm70_vm10 = vmand %vm66_vm3, %vm69_vm8  ;;  %vm77_vm11 = vcmp.eq.s32.totalorder %v47_v6, %v76_v13  ;;  %v84_v15 = vstv %s458_s25  ;;  %vm106_vm3 = vcmp.eq.s32.totalorder %v49_v7, 7 }
  0x11   :  { %v65_v16 = vadd.f32 %v453_v14, %v451_v12  ;;  %v455_v17 = vsel %vm70_vm10, 1.0, %v599_v11  ;;  %vm78_vm13 = vmand %vm74_vm6, %vm77_vm11  ;;  %vm85_vm14 = vcmp.eq.s32.totalorder %v47_v6, %v84_v15  ;;  %v92_v18 = vstv %s672_s26 }
  0x12   :  { %v457_v19 = vsel %vm78_vm13, 1.0, %v599_v11  ;;  %vm86_vm15 = vmand %vm82_vm9, %vm85_vm14  ;;  %vm93_vm0 = vcmp.eq.s32.totalorder %v47_v6, %v92_v18  ;;  %v100_v20 = vstv %s674_s27  ;;  %vm116_vm6 = vcmask 130048  }
  0x13   :  { %v73_v21 = vadd.f32 %v455_v17, %v65_v16  ;;  %vm94_vm1 = vmand %vm90_vm12, %vm93_vm0  ;;  %vm101_vm4 = vcmp.eq.s32.totalorder %v47_v6, %v100_v20  ;;  %v108_v22 = vstv %s676_s28  ;;  %v459_v23 = vsel %vm86_vm15, 1.0, %v599_v11 }
  0x14   :  { %vm109_vm5 = vcmp.eq.s32.totalorder %v47_v6, %v108_v22  ;;  %vm102_vm7 = vmand %vm98_vm2, %vm101_vm4  ;;  %v461_v25 = vsel %vm94_vm1, 1.0, %v599_v11  ;;  %vm163_vm9 = vcmask 261120   ;;  %vm255_vm1 = vcmask 523520  }
  0x15   :  { %v81_v24 = vadd.f32 %v457_v19, %v73_v21  ;;  %vm110_vm8 = vmand %vm106_vm3, %vm109_vm5  ;;  %v463_v27 = vsel %vm102_vm7, 1.0, %v599_v11  ;;  %475 = vmatmul.msk.bf16.vlgmr.msra.gmra.mxu1 %vm163_vm9, %v150_v34  ;;  %vm381_vm4 = vcmask 785920   ;;  %vm387_vm3 = vcmask 1048320  }
  0x16   :  { %v465_v29 = vsel %vm110_vm8, 1.0, %v599_v11  ;;  %v540_v11 = vld [vmem:[%s756_s5 + $0x1] ss:$0 sm:$0xff] }
  0x17   :  { %v89_v26 = vadd.f32 %v459_v23, %v81_v24 }
  0x19   :  { %v97_v28 = vadd.f32 %v461_v25, %v89_v26 }
  0x1b   :  { %v105_v30 = vadd.f32 %v463_v27, %v97_v28 }
  0x1d   :  { %v113_v31 = vadd.f32 %v465_v29, %v105_v30 }
  0x1f   :  { %466 = vmatmul.msk.f32.vlgmr.msra.gmra.mxu0 %vm116_vm6, %v113_v31 }
  0x92   :  { %v176_v37 = vpop.f32.mrf.mxu1 }
  0x9a   :  { %v178_v38 = vpop.f32.mrf.mxu1 }
  0x9c   :  { %v137_v35 = vpop.f32.mrf.mxu0 }
  0x9d   :  { %v149_v36 = vpack.c.bf16 %v137_v35, %v137_v35 }
  0x9f   :  { %484 = vmatmul.msk.bf16.vlgmr.msra.gmra.mxu2 %vm163_vm9, %v149_v36 }
 0x122   :  { %v204_v40 = vpop.f32.mrf.mxu2 }
 0x123   :  { %v205_v41 = vadd.f32 %v204_v40, %v176_v37 }
 0x125   :  { %v212_v42 = vadd.f32 %v539_v39, %v205_v41  ;;  %v532_v41 = vld [vmem:[%s757_s6 + $0x8] sm:$0xff] }
 0x126   :  { %422 = vmatpush.bf16.msrb.mxu1 %v532_v41 }
 0x127   :  { %542 = vtanh.f32 %v212_v42  ;;  %v485_v45 = vmul.f32 -1.442695, %v212_v42  ;;  %v531_v42 = vld [vmem:[%s757_s6] sm:$0xff]  ;;  %s603_s6 = smov [#allocation5]  }
 0x129   :  { %544 = vpow2.f32 %v485_v45 }
 0x12a   :  { %v206_v43 = vpop.f32.mrf.mxu2  ;;  %423 = vmatpush.bf16.msrb.mxu1 %v531_v42 }
 0x12d   :  { %v543_v44 = vpop.eup %542 }
 0x12e   :  { %235 = vrot.lane.b32.xlu0 %v543_v44, %s600_s2 }
 0x12f   :  { %v545_v46 = vpop.eup %544 }
 0x130   :  { %v216_v47 = vadd.f32 1.0, %v545_v46  ;;  %v541_v46 = vld [vmem:[%s758_s7] ss:$0 sm:$0xff] }
 0x132   :  { %546 = vrcp.f32 %v216_v47  ;;  %v228_v53 = vand.u32 2147483648, %v216_v47  ;;  %vm222_vm11 = vweird.f32 %v216_v47  ;;  %v226_v54 = vand.u32 2147483647, %v216_v47 }
 0x134   :  { %v229_v56 = vor.u32 1.1754944e-38, %v228_v53  ;;  %vm227_vm13 = vcmp.eq.f32.partialorder %v226_v54, 8.507059e+37 }
 0x138   :  { %v547_v48 = vpop.eup %546 }
 0x139   :  { %v218_v49 = vmul.f32 %v547_v48, %v216_v47  ;;  %vm223_vm10 = vweird.f32 %v547_v48 }
 0x13a   :  { %vm224_vm12 = vmor %vm222_vm11, %vm223_vm10 }
 0x13b   :  { %v219_v50 = vsub.f32 1.0, %v218_v49 }
 0x13d   :  { %v220_v51 = vmul.f32 %v547_v48, %v219_v50 }
 0x13f   :  { %v221_v52 = vadd.f32 %v547_v48, %v220_v51 }
 0x141   :  { %v225_v55 = vsel %vm224_vm12, %v547_v48, %v221_v52 }
 0x142   :  { %v230_v58 = vsel %vm227_vm13, %v229_v56, %v225_v55 }
 0x143   :  { %v233_v60 = vmul.f32 %v230_v58, %v140_v33 }
 0x1a0   :  { %v236_v57 = vpop.permute.xlu0 %235 }
 0x1a1   :  { %v238_v59 = vmul.f32 %v236_v57, %v230_v58 }
 0x1a3   :  { %240 = vrot.lane.b32.xlu0 %v238_v59, %s601_s14 }
 0x1ab   :  { %357 = vrot.lane.b32.xlu0 %v140_v33, %s600_s2 }
 0x215   :  { %v241_v61 = vpop.permute.xlu0 %240 }
 0x216   :  { %v695_v62 = vadd.f32 %v241_v61, %v233_v60 }
 0x218   :  { %548 = vtanh.f32 %v695_v62 }
 0x21d   :  { %v358_v32 = vpop.permute.xlu0 %357 }
 0x21e   :  { %v549_v63 = vpop.eup %548 }
 0x21f   :  { %246 = vrot.lane.b32.xlu1 %v549_v63, %s600_s2 }
 0x227   :  { %269 = vrot.lane.b32.xlu1 %v150_v34, %s600_s2 }
 0x291   :  { %v247_v4 = vpop.permute.xlu1 %246 }
 0x292   :  { %v249_v5 = vmul.f32 %v247_v4, %v230_v58 }
 0x294   :  { %v267_v6 = vpack.c.bf16 %v249_v5, %v249_v5 }
 0x296   :  { %300 = vrot.lane.b32.xlu2 %v267_v6, %s601_s14 }
 0x299   :  { %v270_v7 = vpop.permute.xlu1 %269 }
 0x29a   :  { %502 = vmatmul.msk.bf16.vlgmr.msra.gmra.mxu3 %vm163_vm9, %v270_v7 }
 0x2f0   :  { %v301_v8 = vpop.permute.xlu2 %300 }
 0x2f1   :  { %511 = vmatmul.msk.bf16.vlgmr.msrb.gmra.mxu0 %vm163_vm9, %v301_v8 }
 0x31d   :  { %v295_v9 = vpop.f32.mrf.mxu3 }
 0x325   :  { %v297_v10 = vpop.f32.mrf.mxu3 }
 0x36e   :  { %v326_v12 = vpop.f32.mrf.mxu0 }
 0x36f   :  { %v327_v13 = vadd.f32 %v326_v12, %v295_v9 }
 0x371   :  { %v335_v14 = vadd.f32 %v540_v11, %v327_v13 }
 0x373   :  { %550 = vtanh.f32 %v335_v14  ;;  %v513_v17 = vmul.f32 -1.442695, %v335_v14 }
 0x375   :  { %552 = vpow2.f32 %v513_v17 }
 0x376   :  { %v328_v15 = vpop.f32.mrf.mxu0 }
 0x379   :  { %v551_v16 = vpop.eup %550 }
 0x37a   :  { %362 = vrot.lane.b32.xlu2 %v551_v16, %s600_s2 }
 0x37b   :  { %v553_v18 = vpop.eup %552 }
 0x37c   :  { %v339_v19 = vadd.f32 1.0, %v553_v18 }
 0x37e   :  { %554 = vrcp.f32 %v339_v19  ;;  %v351_v25 = vand.u32 2147483648, %v339_v19  ;;  %vm345_vm15 = vweird.f32 %v339_v19  ;;  %v349_v26 = vand.u32 2147483647, %v339_v19 }
 0x380   :  { %v352_v28 = vor.u32 1.1754944e-38, %v351_v25  ;;  %vm350_vm2 = vcmp.eq.f32.partialorder %v349_v26, 8.507059e+37 }
 0x384   :  { %v555_v20 = vpop.eup %554 }
 0x385   :  { %v341_v21 = vmul.f32 %v555_v20, %v339_v19  ;;  %vm346_vm14 = vweird.f32 %v555_v20 }
 0x386   :  { %vm347_vm0 = vmor %vm345_vm15, %vm346_vm14 }
 0x387   :  { %v342_v22 = vsub.f32 1.0, %v341_v21 }
 0x389   :  { %v343_v23 = vmul.f32 %v555_v20, %v342_v22 }
 0x38b   :  { %v344_v24 = vadd.f32 %v555_v20, %v343_v23 }
 0x38d   :  { %v348_v27 = vsel %vm347_vm0, %v555_v20, %v344_v24 }
 0x38e   :  { %v353_v29 = vsel %vm350_vm2, %v352_v28, %v348_v27 }
 0x38f   :  { %v360_v33 = vmul.f32 %v358_v32, %v353_v29 }
 0x3d4   :  { %v363_v30 = vpop.permute.xlu2 %362 }
 0x3d5   :  { %v365_v31 = vmul.f32 %v363_v30, %v353_v29 }
 0x3d7   :  { %367 = vrot.lane.b32.xlu1 %v365_v31, %s601_s14 }
 0x3df   :  { %251 = vrot.lane.b32.xlu1 %v249_v5, %s601_s14 }
 0x449   :  { %v368_v34 = vpop.permute.xlu1 %367 }
 0x44a   :  { %v370_v35 = vadd.f32 %v368_v34, %v360_v33 }
 0x44c   :  { %556 = vtanh.f32 %v370_v35 }
 0x451   :  { %v252_v36 = vpop.permute.xlu1 %251 }
 0x452   :  { %v557_v37 = vpop.eup %556  ;;  %254 = vst.msk [vmem:[%s760_s9] sm:$0xff] %vm163_vm9, %v252_v36 }
 0x453   :  { %373 = vrot.lane.b32.xlu2 %v557_v37, %s600_s2  ;;  %256 = vst.msk [vmem:[%s760_s9] sm:$0xff] %vm255_vm1, %v695_v62 }
 0x4ad   :  { %v374_v38 = vpop.permute.xlu2 %373 }
 0x4ae   :  { %v376_v39 = vmul.f32 %v374_v38, %v353_v29 }
 0x4b0   :  { %v389_v40 = vpack.c.bf16 %v376_v39, %v376_v39  ;;  %378 = vrot.lane.b32.xlu2 %v376_v39, %s602_s1 }
 0x4b2   :  { %399 = vrot.lane.b32.xlu0 %v389_v40, %s601_s14 }
 0x4ba   :  { %384 = vrot.lane.b32.xlu0 %v370_v35, %s600_s2  ;;  %s435_s2 = sshll.u32 %s603_s6, 4  ;;  %s436_s2 = int_to_ptr.vmem [resolvable:$true] %s435_s2 }
 0x50a   :  { %v379_v43 = vpop.permute.xlu2 %378 }
 0x50b   :  { %382 = vst.msk [vmem:[%s760_s9] sm:$0xff] %vm381_vm4, %v379_v43 }
 0x524   :  { %v400_v44 = vpop.permute.xlu0 %399 }
 0x525   :  { %522 = vmatmul.msk.bf16.vlgmr.msrb.gmra.mxu1 %vm163_vm9, %v400_v44 }
 0x52c   :  { %v385_v45 = vpop.permute.xlu0 %384 }
 0x52d   :  { %388 = vst.msk [vmem:[%s760_s9] sm:$0xff] %vm387_vm3, %v385_v45 }
 0x5a2   :  { %v425_v47 = vpop.f32.mrf.mxu1 }
 0x5a3   :  { %v426_v48 = vadd.f32 %v541_v46, %v425_v47 }
 0x5a5   :  { %429 = vst [vmem:[#allocation5] sm:$0xff] %v426_v48 }
 0x5a6   :  { %440 = dma.vmem_to_hbm [thread:$0]  %s436_s2, 128, %s438_s16, [#allocation3]  }
 0x5aa   :  { %v427_v49 = vpop.f32.mrf.mxu1 }
 0x5ab   :  { %596 = dma.done.wait [#allocation3], 128  }
 0x5ac   :  { %597 = vsyncadd [#allocation3], 4294967168 }
 0x5ad   :  { %449 = vsyncpa [#allocation3], 1 }
 0x5ae   :  { %450 = vsyncpa [#allocation4], 1 }

</bundles_post_ra>
